<compile_context>
chip_gen: v7x
topology: tpu7x:2x2x1
jax: 0.10.0
libtpu: 0.0.40
codegen_flags: <defaults>
</compile_context>

<pallas_src>
import functools

import jax
import jax.numpy as jnp
from jax import lax
from jax.experimental import pallas as pl
from jax.experimental.pallas import tpu as pltpu


def _focal_loss_kernel(logits_ref, targets_ref, out_ref, *,
                       alpha, gamma, n_rows, tile_n):
    """One grid step: focal-loss partial sum for one row tile -> own out block."""
    i = pl.program_id(0)

    logits = logits_ref[...].astype(jnp.float32)               # (tile_n, C) f32 compute
    tgt = targets_ref[...]                                      # (tile_n, 1) int32
    tn, c = logits.shape

    # Numerically stable log-softmax pieces; single exp over the (tile_n, C) tile.
    row_max = jnp.max(logits, axis=-1, keepdims=True)           # (tile_n, 1)
    shifted = logits - row_max
    sumexp = jnp.sum(jnp.exp(shifted), axis=-1, keepdims=True)  # (tile_n, 1)

    # Target-class logit via a one-hot select (no dynamic gather on TPU).
    cls_ids = lax.broadcasted_iota(jnp.int32, (tn, c), 1)
    tgt_shifted = jnp.sum(jnp.where(cls_ids == tgt, shifted, 0.0),
                          axis=-1, keepdims=True)

    ce = jnp.log(sumexp) - tgt_shifted                           # cross entropy per row
    pt = jnp.exp(-ce)                                            # tiny per-row EUP exp
    omp = 1.0 - pt
    if float(gamma) == float(int(gamma)):
        g = int(gamma)
        focal_w = jnp.ones_like(omp) if g == 0 else omp ** g    # integer_pow -> VPU muls
    else:
        # Guard the exp(gamma*log(omp)) lowering against omp == 0.
        focal_w = jnp.where(omp > 0.0, omp, 1.0) ** gamma
        focal_w = jnp.where(omp > 0.0, focal_w, 0.0)
    focal = alpha * focal_w * ce                                 # (tile_n, 1)

    # The last grid block may overrun N (input is NOT padded); garbage rows may
    # be NaN/inf but the select replaces them with 0 before the reduction.
    row_ids = i * tile_n + lax.broadcasted_iota(jnp.int32, (tn, 1), 0)
    focal = jnp.where(row_ids < n_rows, focal, 0.0)

    partial = jnp.sum(focal)                                     # f32 scalar
    out_ref[...] = jnp.broadcast_to(partial, out_ref.shape)      # fill this tile's block


def focal_loss(logits, targets, *, alpha=1.0, gamma=2, reduction="mean",
               tile_n=None, target_bytes=None):
    """logits: (N, C) float32/bfloat16, targets: (N,) int. Returns scalar float32."""
    n, c = logits.shape
    itemsize = jnp.dtype(logits.dtype).itemsize
    row_align = 16 if itemsize == 2 else 8                       # sublane packing
    c_pad = ((c + 127) // 128) * 128                             # lane-padded class count

    if target_bytes is None:
        # ~4 MiB per pipeline buffer; double-buffered => ~8 MiB, inside the
        # scoped-VMEM defaults of v5e/v6e and v7x's 64 MiB physical VMEM.
        # On v7x (3.2 TB/s HBM) passing target_bytes=8<<20 buys a bit more.
        target_bytes = 4 * 1024 * 1024
    # Real VMEM bytes per row: lane-padded logits row + int32 targets column,
    # which pads to one (8,128) word tile per 8 rows (= 512 B/row).
    bytes_per_row = c_pad * itemsize + 512

    n_aligned = ((n + row_align - 1) // row_align) * row_align
    if tile_n is None:
        tile_n = max(row_align, target_bytes // bytes_per_row)
    tile_n = max(row_align, min(int(tile_n), n_aligned))
    tile_n = (tile_n // row_align) * row_align
    num_tiles = pl.cdiv(n, tile_n)

    # No jnp.pad of logits (would read+write the whole array in HBM before the
    # kernel); ragged last block is masked in-kernel instead.
    targets2d = targets.astype(jnp.int32).reshape(n, 1)

    vmem_need = 2 * tile_n * bytes_per_row + 2 * 8 * 128 * 4     # double-buffered in/out
    vmem_limit = int(min(max(2 * vmem_need, 32 * 1024 * 1024), 60 * 1024 * 1024))

    kernel = functools.partial(
        _focal_loss_kernel,
        alpha=float(alpha), gamma=gamma, n_rows=n, tile_n=tile_n)

    partials = pl.pallas_call(
        kernel,
        out_shape=jax.ShapeDtypeStruct((num_tiles, 8, 128), jnp.float32),
        grid_spec=pltpu.PrefetchScalarGridSpec(
            num_scalar_prefetch=0,
            grid=(num_tiles,),
            in_specs=[
                pl.BlockSpec((tile_n, c), lambda i: (i, 0)),
                pl.BlockSpec((tile_n, 1), lambda i: (i, 0)),
            ],
            out_specs=pl.BlockSpec((1, 8, 128), lambda i: (i, 0, 0)),
        ),
        compiler_params=pltpu.CompilerParams(
            dimension_semantics=("parallel",),    # independent tiles -> megacore-friendly
            vmem_limit_bytes=vmem_limit),
    )(logits, targets2d)

    total = jnp.sum(partials[:, 0, 0])
    if reduction == "mean":
        return total / jnp.float32(n)
    return total                                                  # reduction == 'sum'


def focal_loss_ref(logits, targets, *, alpha=1.0, gamma=2, reduction="mean"):
    logp = jax.nn.log_softmax(logits.astype(jnp.float32), axis=-1)
    ce = -jnp.take_along_axis(logp, targets[:, None].astype(jnp.int32), axis=-1)[:, 0]
    pt = jnp.exp(-ce)
    fl = alpha * (1.0 - pt) ** gamma * ce
    return jnp.mean(fl) if reduction == "mean" else jnp.sum(fl)


if __name__ == "__main__":
    key = jax.random.PRNGKey(0)
    k_logits, k_tgt = jax.random.split(key)

    # test 1: small single-tile path (batch=8, 32 classes), default tile sizing
    logits = jax.random.normal(k_logits, (8, 32), dtype=jnp.float32)
    targets = jax.random.randint(k_tgt, (8,), 0, 32, dtype=jnp.int32)
    out = focal_loss(logits, targets)
    jax.block_until_ready(out)
    ref = focal_loss_ref(logits, targets)
    assert jnp.allclose(out, ref, atol=1e-5, rtol=1e-5), (out, ref)

    # test 2: multi-tile grid with ragged (unpadded) tail, forced tile_n=32
    logits2 = jax.random.normal(k_logits, (70, 32), dtype=jnp.float32)
    targets2 = jax.random.randint(k_tgt, (70,), 0, 32, dtype=jnp.int32)
    out2 = focal_loss(logits2, targets2, tile_n=32)
    jax.block_until_ready(out2)
    ref2 = focal_loss_ref(logits2, targets2)
    assert jnp.allclose(out2, ref2, atol=1e-5, rtol=1e-5), (out2, ref2)

    # test 3: bf16 logits (half the HBM bytes), compute still f32 inside kernel
    logits3 = logits2.astype(jnp.bfloat16)
    out3 = focal_loss(logits3, targets2, tile_n=32)
    jax.block_until_ready(out3)
    ref3 = focal_loss_ref(logits3.astype(jnp.float32), targets2)
    assert jnp.allclose(out3, ref3, atol=1e-4, rtol=1e-4), (out3, ref3)

    # test 4: default (auto) tile sizing with a non-aligned N, plus reduction='sum'
    logits4 = jax.random.normal(k_logits, (300, 32), dtype=jnp.float32)
    targets4 = jax.random.randint(k_tgt, (300,), 0, 32, dtype=jnp.int32)
    out4 = focal_loss(logits4, targets4, reduction="sum")
    jax.block_until_ready(out4)
    ref4 = focal_loss_ref(logits4, targets4, reduction="sum")
    assert jnp.allclose(out4, ref4, atol=1e-3, rtol=1e-5), (out4, ref4)

    print("KERNEL_OK")
</pallas_src>

<mosaic_0001>
module attributes {stable_mosaic.version = 11 : i64} {
  func.func @_focal_loss_kernel(%arg0: i32, %arg1: memref<8x32xf32, #tpu.memory_space<vmem>>, %arg2: memref<8x1xi32, #tpu.memory_space<vmem>>, %arg3: memref<1x8x128xf32, #tpu.memory_space<vmem>>) attributes {dimension_semantics = [#tpu.dimension_semantics<parallel>], iteration_bounds = array<i64: 1>, scalar_prefetch = 0 : i64, scratch_operands = 0 : i64, tpu.core_type = #tpu.core_type<tc>, window_params = [{transform_indices = @transform_0, window_bounds = array<i64: 8, 32>}, {transform_indices = @transform_1, window_bounds = array<i64: 8, 1>}, {transform_indices = @transform_2, window_bounds = array<i64: 1, 8, 128>}]} {
    %c0 = arith.constant 0 : index
    %c0_0 = arith.constant 0 : index
    %0 = vector.load %arg1[%c0, %c0_0] : memref<8x32xf32, #tpu.memory_space<vmem>>, vector<8x32xf32>
    %c0_1 = arith.constant 0 : index
    %c0_2 = arith.constant 0 : index
    %1 = vector.load %arg2[%c0_1, %c0_2] : memref<8x1xi32, #tpu.memory_space<vmem>>, vector<8x1xi32>
    %cst = arith.constant dense<0xFF800000> : vector<8xf32>
    %2 = vector.multi_reduction <maximumf>, %0, %cst [1] : vector<8x32xf32> to vector<8xf32>
    %3 = vector.shape_cast %2 : vector<8xf32> to vector<8x1xf32>
    %4 = vector.broadcast %3 : vector<8x1xf32> to vector<8x32xf32>
    %5 = arith.subf %0, %4 : vector<8x32xf32>
    %6 = math.exp %5 : vector<8x32xf32>
    %cst_3 = arith.constant dense<0.000000e+00> : vector<8xf32>
    %7 = vector.multi_reduction <add>, %6, %cst_3 [1] : vector<8x32xf32> to vector<8xf32>
    %8 = vector.shape_cast %7 : vector<8xf32> to vector<8x1xf32>
    %9 = tpu.iota {dimensions = array<i32: 1>} : vector<8x32xi32>
    %10 = vector.broadcast %1 : vector<8x1xi32> to vector<8x32xi32>
    %11 = arith.cmpi eq, %9, %10 : vector<8x32xi32>
    %cst_4 = arith.constant 0.000000e+00 : f32
    %12 = vector.broadcast %cst_4 : f32 to vector<8x32xf32>
    %13 = arith.select %11, %5, %12 : vector<8x32xi1>, vector<8x32xf32>
    %cst_5 = arith.constant dense<0.000000e+00> : vector<8xf32>
    %14 = vector.multi_reduction <add>, %13, %cst_5 [1] : vector<8x32xf32> to vector<8xf32>
    %15 = vector.shape_cast %14 : vector<8xf32> to vector<8x1xf32>
    %16 = math.log %8 : vector<8x1xf32>
    %17 = arith.subf %16, %15 : vector<8x1xf32>
    %cst_6 = arith.constant 0.000000e+00 : f32
    %18 = vector.broadcast %cst_6 : f32 to vector<8x1xf32>
    %19 = arith.subf %18, %17 : vector<8x1xf32>
    %20 = math.exp %19 : vector<8x1xf32>
    %cst_7 = arith.constant 1.000000e+00 : f32
    %21 = vector.broadcast %cst_7 : f32 to vector<8x1xf32>
    %22 = arith.subf %21, %20 : vector<8x1xf32>
    %23 = arith.mulf %22, %22 : vector<8x1xf32>
    %cst_8 = arith.constant 1.000000e+00 : f32
    %24 = vector.broadcast %cst_8 : f32 to vector<8x1xf32>
    %25 = arith.mulf %24, %23 : vector<8x1xf32>
    %26 = arith.mulf %25, %17 : vector<8x1xf32>
    %c8_i32 = arith.constant 8 : i32
    %27 = arith.muli %arg0, %c8_i32 : i32
    %28 = tpu.iota {dimensions = array<i32: 0>} : vector<8x1xi32>
    %29 = vector.broadcast %27 : i32 to vector<8x1xi32>
    %30 = arith.addi %29, %28 : vector<8x1xi32>
    %c8_i32_9 = arith.constant 8 : i32
    %31 = vector.broadcast %c8_i32_9 : i32 to vector<8x1xi32>
    %32 = arith.cmpi slt, %30, %31 : vector<8x1xi32>
    %cst_10 = arith.constant 0.000000e+00 : f32
    %33 = vector.broadcast %cst_10 : f32 to vector<8x1xf32>
    %34 = arith.select %32, %26, %33 : vector<8x1xi1>, vector<8x1xf32>
    %35 = vector.shape_cast %34 : vector<8x1xf32> to vector<1x8x1xf32>
    %cst_11 = arith.constant dense<0.000000e+00> : vector<1xf32>
    %36 = vector.multi_reduction <add>, %35, %cst_11 [1, 2] : vector<1x8x1xf32> to vector<1xf32>
    %37 = vector.shape_cast %36 : vector<1xf32> to vector<1x1x1xf32>
    %38 = vector.extract %37[0, 0, 0] : f32 from vector<1x1x1xf32>
    %39 = vector.broadcast %38 : f32 to vector<1x8x128xf32>
    %c0_12 = arith.constant 0 : index
    %c0_13 = arith.constant 0 : index
    %c0_14 = arith.constant 0 : index
    %40 = vector.load %arg3[%c0_12, %c0_13, %c0_14] : memref<1x8x128xf32, #tpu.memory_space<vmem>>, vector<1x8x128xf32>
    tpu.vector_store %arg3[%c0_12, %c0_13, %c0_14], %39 {strides = array<i32>} : memref<1x8x128xf32, #tpu.memory_space<vmem>>, vector<1x8x128xf32>,
    return
  }
  func.func @transform_0(%arg0: i32) -> (i32, i32) {
    %c0_i32 = arith.constant 0 : i32
    %c0_i32_0 = arith.constant 0 : i32
    return %arg0, %c0_i32 : i32, i32
  }
  func.func @transform_1(%arg0: i32) -> (i32, i32) {
    %c0_i32 = arith.constant 0 : i32
    %c0_i32_0 = arith.constant 0 : i32
    return %arg0, %c0_i32 : i32, i32
  }
  func.func @transform_2(%arg0: i32) -> (i32, i32, i32) {
    %c0_i32 = arith.constant 0 : i32
    %c0_i32_0 = arith.constant 0 : i32
    %c0_i32_1 = arith.constant 0 : i32
    return %arg0, %c0_i32, %c0_i32_0 : i32, i32, i32
  }
}

</mosaic_0001>

<bundles_post_ra>
// kernel: tpu_custom_call.1
= control target key start
LH: loop header
LB: loop body
LE: loop exit
PB: predicated region body
PF: predicated region fallthrough
CT: control target
= control target key end

     0   :  { %vm14_vm0 = vcmask 261120   ;;  %s150_s0 = inlined_call_operand.vmem [shape: f32[8,32], index: 0, kind: input, shape index: {}]   ;;  %s151_s1 = inlined_call_operand.vmem [shape: s32[8,1], index: 1, kind: input, shape index: {}]   ;;  %s152_s2 = inlined_call_operand.hbm [shape: f32[1,8,128], index: 2, kind: output, shape index: {}]  }
   0x1   :  { %v12_v0 = vld [vmem:[%s150_s0] sm:$0xff] }
   0x2   :  { %7 = vsyncpa [#allocation3], 0  ;;  %v15_v1 = vsel %vm14_vm0, %v12_v0, -inf  ;;  %v112_v2 = vmov 0   ;;  %v13_v3 = vld [vmem:[%s151_s1] sm:$0xff]  ;;  %v24_v7 = vlaneseq  ;;  %vm50_vm2 = vcmask 7168  }
   0x3   :  { %81 = vset.pattern.permute.xlu0 %v112_v2  ;;  %s113_s0 = smov [#allocation2]  }
   0x4   :  { %16 = vmax.xlane.f32.xlu0 %v15_v1  ;;  %v25_v8 = vand.u32 127, %v24_v7  ;;  %s69_s1 = sshll.u32 %s113_s0, 4  ;;  %s70_s1 = int_to_ptr.vmem [resolvable:$true] %s69_s1 }
   0x5   :  { %s88_s14 = scalar_lea.vmem %s70_s1, 128  ;;  %p93_p1 = scmp.lt.s32.totalorder %s70_s1, %s70_s1 }
   0x6   :  { %p89_p0 = scmp.ne.s32.totalorder %s70_s1, %s88_s14  ;;  %p94_p2 = scmp.lt.s32.totalorder %s88_s14, %s88_s14 }
   0x8   :  { %p95_p3 = por %p94_p2, %p93_p1 }
   0xa   :  { %p96_p4 = pnand %p95_p3, %p89_p0 }
  0x1a   :  { %27 = vperm.xlu0 %81, %v13_v3  }
  0x91   :  { %v17_v4 = vpop.xlane.xlu0 %16 }
  0x92   :  { %v18_v5 = vsub.f32 %v12_v0, %v17_v4 }
  0x94   :  { %v19_v6 = vmul.f32 1.442695, %v18_v5 }
  0x96   :  { %82 = vpow2.f32 %v19_v6 }
  0x99   :  { %v28_v9 = vpop.permute.xlu0 %27 }
  0x9a   :  { %vm29_vm1 = vcmp.eq.s32.totalorder %v25_v8, %v28_v9 }
  0x9b   :  { %v30_v12 = vsel %vm29_vm1, %v18_v5, 0.0 }
  0x9c   :  { %v31_v13 = vsel %vm14_vm0, %v30_v12, 0.0 }
  0xa0   :  { %v83_v10 = vpop.eup %82 }
  0xa1   :  { %v21_v11 = vsel %vm14_vm0, %v83_v10, 0.0 }
  0xa2   :  { %22 = vadd.xlane.f32.xlu1 %v21_v11 }
  0xa6   :  { %32 = vadd.xlane.f32.xlu1 %v31_v13 }
 0x12f   :  { %v23_v14 = vpop.xlane.xlu1 %22 }
 0x130   :  { %84 = vlog2.f32 %v23_v14 }
 0x133   :  { %v33_v17 = vpop.xlane.xlu1 %32 }
 0x13a   :  { %v85_v15 = vpop.eup %84 }
 0x13b   :  { %v35_v16 = vmul.f32 0.6931472, %v85_v15 }
 0x13d   :  { %v36_v18 = vsub.f32 %v35_v16, %v33_v17 }
 0x13f   :  { %v37_v19 = vsub.f32 0.0, %v36_v18 }
 0x141   :  { %v38_v20 = vmul.f32 1.442695, %v37_v19 }
 0x143   :  { %86 = vpow2.f32 %v38_v20 }
 0x14d   :  { %v87_v21 = vpop.eup %86 }
 0x14e   :  { %v40_v22 = vsub.f32 1.0, %v87_v21 }
 0x150   :  { %v41_v23 = vmul.f32 %v40_v22, %v40_v22 }
 0x152   :  { %v42_v24 = vmul.f32 %v41_v23, %v36_v18 }
 0x154   :  { %v51_v25 = vsel %vm50_vm2, %v42_v24, 0.0 }
 0x155   :  { %52 = vadd.xlane.f32.xlu1 %v51_v25 }
 0x1e2   :  { %v53_v26 = vpop.xlane.xlu1 %52 }
 0x1e3   :  { %v54_v27 = vrot.slane %v53_v26, 4 }
 0x1e5   :  { %v55_v28 = vadd.f32 %v54_v27, %v53_v26 }
 0x1e7   :  { %v56_v29 = vrot.slane %v55_v28, 2 }
 0x1e9   :  { %v57_v30 = vadd.f32 %v56_v29, %v55_v28 }
 0x1eb   :  { %v58_v31 = vrot.slane %v57_v30, 1 }
 0x1ed   :  { %v59_v32 = vadd.f32 %v58_v31, %v57_v30 }
 0x1ef   :  { %77 = vpush %v59_v32 }
 0x220   :  { %s78_s13 = spop %77 }
 0x221   :  { %v61_v33 = vstv %s78_s13 }
 0x222   :  { %62 = vst [vmem:[#allocation2] sm:$0xff] %v61_v33 }
 0x223   :  { %99 = shalt.err (!%p96_p4)
}
 0x224   :  { %s100_s17 = scalar_lea.hbm %s152_s2, 128 }
 0x225   :  { %p101_p5 = scmp.ne.s32.totalorder %s152_s2, %s100_s17  ;;  %p104_p6 = scmp.lt.u32.totalorder %s100_s17, %s152_s2 }
 0x227   :  { %p106_p7 = pnand %p104_p6, %p101_p5 }
 0x229   :  { %109 = shalt.err (!%p106_p7)
}
 0x22a   :  { %72 = dma.vmem_to_hbm [thread:$0]  %s70_s1, 128, %s152_s2, [#allocation3]  }
 0x22b   :  { %110 = dma.done.wait [#allocation3], 128  }
 0x22c   :  { %111 = vsyncadd [#allocation3], 4294967168 }
 0x22d   :  { %76 = vsyncpa [#allocation3], 1 }

</bundles_post_ra>
